<compile_context>
chip_gen: v6e
topology: v6e:2x2x1
jax: 0.10.0
libtpu: 0.0.40
codegen_flags: <defaults>
</compile_context>

<pallas_src>
import functools

import jax
import jax.numpy as jnp
import numpy as np
from jax.experimental import pallas as pl
from jax.experimental.pallas import tpu as pltpu


def _ga_kernel(x_ref, pt_ref, w1_ref, shift1_ref, w2_ref, b2_ref, o_ref,
               acc_ref):
    # x_ref:      (1, C, tHW) f32  current (batch, HW-chunk) slab
    # pt_ref:     (tHW, Pp)   f32  pooling matrix chunk (transposed, padded)
    # w1_ref:     (C, C)      bf16 conv1 weight (out, in), BN scale folded in
    # shift1_ref: (C, 1)      f32  folded conv1 bias + BN shift
    # w2_ref:     (C, C)      bf16 conv2 weight (out, in)
    # b2_ref:     (C, 1)      f32  conv2 bias
    # o_ref:      (1, C, Pp)       output (lane-padded)
    # acc_ref:    (C, Pp)     f32  pooled accumulator (resident across k axis)
    k = pl.program_id(1)

    @pl.when(k == 0)
    def _init():
        acc_ref[...] = jnp.zeros_like(acc_ref)

    # adaptive average pool chunk: (C, tHW) @ (tHW, Pp) -> (C, Pp), f32 acc
    x = x_ref[0].astype(jnp.bfloat16)
    pt = pt_ref[...].astype(jnp.bfloat16)
    acc_ref[...] += jnp.dot(x, pt, preferred_element_type=jnp.float32)

    @pl.when(k == pl.num_programs(1) - 1)
    def _finalize():
        pooled = acc_ref[...].astype(jnp.bfloat16)                   # (C, Pp)
        y = jnp.dot(w1_ref[...], pooled,
                    preferred_element_type=jnp.float32)              # conv1
        y = jnp.maximum(y + shift1_ref[...], 0.0)                    # bias+BN, relu
        out = jnp.dot(w2_ref[...], y.astype(jnp.bfloat16),
                      preferred_element_type=jnp.float32) + b2_ref[...]  # conv2
        o_ref[0] = out.astype(o_ref.dtype)


def _adaptive_pool_matrix_t(H, W, hp, wp, p_pad):
    """PT[h*W+w, i*wp+j] = 1/area if pixel (h,w) is in adaptive bin (i,j).

    Columns beyond hp*wp (up to p_pad) are zero padding for lane-dense output.
    """
    PT = np.zeros((H * W, p_pad), dtype=np.float32)
    for i in range(hp):
        h0, h1 = (i * H) // hp, -(-((i + 1) * H) // hp)   # floor / ceil
        for j in range(wp):
            w0, w1 = (j * W) // wp, -(-((j + 1) * W) // wp)
            area = (h1 - h0) * (w1 - w0)
            for h in range(h0, h1):
                for w in range(w0, w1):
                    PT[h * W + w, i * wp + j] = 1.0 / area
    return jnp.asarray(PT)


def _pick_thw(C, HW, p_pad, budget_bytes=40 * 1024 * 1024):
    """Largest HW tile (HW itself, or a 128-multiple divisor of HW) whose
    double-buffered x + pool blocks (f32) plus fixed operands fit the budget."""
    fixed = 2 * C * C * 2 + 2 * 2 * C * 4 + C * p_pad * 4 + 2 * C * p_pad * 4

    def need(t):
        return fixed + 2 * 4 * t * (C + p_pad)

    if need(HW) <= budget_bytes:
        return HW
    t = (HW // 128) * 128
    while t >= 128:
        if HW % t == 0 and need(t) <= budget_bytes:
            return t
        t -= 128
    return HW  # no clean divisor found; fall back to full HW


@functools.partial(jax.jit, static_argnames=("num_partitions",))
def global_attention(x, params, num_partitions=(8, 8)):
    """x: (B, C, H, W) NCHW float32.  Returns (B, C, hp, wp)."""
    B, C, H, W = x.shape
    hp, wp = num_partitions
    HW = H * W
    P = hp * wp
    P_pad = max(128, ((P + 127) // 128) * 128)        # lane-dense output width

    # free reshape; stays in the NCHW-derived (C, spatial) layout
    x_flat = x.reshape(B, C, HW)

    pool_t = _adaptive_pool_matrix_t(H, W, hp, wp, P_pad)        # (HW, P_pad)

    eps = 1e-5
    bn_scale = params["bn_gamma"] / jnp.sqrt(params["bn_var"] + eps)   # (C,)

    # fold conv1 bias + BN into the conv1 weight and a single per-channel shift
    w1 = params["conv1_w"].reshape(C, C)                          # (out, in)
    w1_folded = (w1 * bn_scale[:, None]).astype(jnp.bfloat16)
    shift1 = (bn_scale * params["conv1_b"] + params["bn_beta"]
              - params["bn_mean"] * bn_scale).reshape(C, 1)
    w2 = params["conv2_w"].reshape(C, C).astype(jnp.bfloat16)     # (out, in)
    b2 = params["conv2_b"].reshape(C, 1)

    tHW = _pick_thw(C, HW, P_pad)
    num_k = HW // tHW

    out = pl.pallas_call(
        _ga_kernel,
        out_shape=jax.ShapeDtypeStruct((B, C, P_pad), x.dtype),
        grid_spec=pltpu.PrefetchScalarGridSpec(
            num_scalar_prefetch=0,
            grid=(B, num_k),
            in_specs=[
                pl.BlockSpec((1, C, tHW), lambda b, k: (b, 0, k)),   # x
                pl.BlockSpec((tHW, P_pad), lambda b, k: (k, 0)),     # pool^T
                pl.BlockSpec((C, C), lambda b, k: (0, 0)),           # w1 (folded)
                pl.BlockSpec((C, 1), lambda b, k: (0, 0)),           # shift1
                pl.BlockSpec((C, C), lambda b, k: (0, 0)),           # w2
                pl.BlockSpec((C, 1), lambda b, k: (0, 0)),           # b2
            ],
            out_specs=pl.BlockSpec((1, C, P_pad), lambda b, k: (b, 0, 0)),
            scratch_shapes=[pltpu.VMEM((C, P_pad), jnp.float32)],
        ),
        compiler_params=pltpu.CompilerParams(
            dimension_semantics=("parallel", "arbitrary"),
            vmem_limit_bytes=48 * 1024 * 1024),
    )(x_flat, pool_t, w1_folded, shift1, w2, b2)

    # drop lane padding; reshape is NCHW-native (no transpose)
    return out[:, :, :P].reshape(B, C, hp, wp)


def _reference(x, params, num_partitions=(8, 8)):
    """Pure-JAX f32 reference matching the PyTorch module (BN in eval mode)."""
    B, C, H, W = x.shape
    hp, wp = num_partitions
    P = hp * wp
    pt = _adaptive_pool_matrix_t(H, W, hp, wp, P)                 # (HW, P)
    pooled = jnp.einsum("bcs,sp->bcp", x.reshape(B, C, H * W), pt)
    w1 = params["conv1_w"].reshape(C, C)
    w2 = params["conv2_w"].reshape(C, C)
    y = jnp.einsum("oc,bcp->bop", w1, pooled) + params["conv1_b"][:, None]
    eps = 1e-5
    scale = params["bn_gamma"] / jnp.sqrt(params["bn_var"] + eps)
    y = (y - params["bn_mean"][:, None]) * scale[:, None] + params["bn_beta"][:, None]
    y = jnp.maximum(y, 0.0)
    out = jnp.einsum("oc,bcp->bop", w2, y) + params["conv2_b"][:, None]
    return out.reshape(B, C, hp, wp)


if __name__ == "__main__":
    key = jax.random.PRNGKey(0)
    B, C, H, W = 2, 4, 16, 16
    num_partitions = (8, 8)

    keys = jax.random.split(key, 8)
    x = jax.random.normal(keys[0], (B, C, H, W), dtype=jnp.float32)

    params = {
        "conv1_w": 0.2 * jax.random.normal(keys[1], (C, C, 1, 1), jnp.float32),
        "conv1_b": 0.1 * jax.random.normal(keys[2], (C,), jnp.float32),
        "conv2_w": 0.2 * jax.random.normal(keys[3], (C, C, 1, 1), jnp.float32),
        "conv2_b": 0.1 * jax.random.normal(keys[4], (C,), jnp.float32),
        "bn_gamma": 1.0 + 0.1 * jax.random.normal(keys[5], (C,), jnp.float32),
        "bn_beta": 0.1 * jax.random.normal(keys[6], (C,), jnp.float32),
        "bn_mean": 0.05 * jax.random.normal(keys[7], (C,), jnp.float32),
        "bn_var": jnp.ones((C,), jnp.float32),
    }

    out = global_attention(x, params, num_partitions=num_partitions)
    out = jax.block_until_ready(out)

    ref = _reference(x, params, num_partitions=num_partitions)
    assert out.shape == (B, C, *num_partitions)
    # bf16 MXU operands with f32 accumulation -> relaxed tolerance vs f32 ref
    np_ok = jnp.allclose(out, ref, atol=2e-2, rtol=2e-2)
    assert bool(np_ok), "Pallas kernel does not match reference"

    print("KERNEL_OK")
</pallas_src>

<mosaic_0001>
module attributes {stable_mosaic.version = 11 : i64} {
  func.func @_ga_kernel(%arg0: i32, %arg1: i32, %arg2: memref<1x4x256xf32, #tpu.memory_space<vmem>>, %arg3: memref<256x128xf32, #tpu.memory_space<vmem>>, %arg4: memref<4x4xbf16, #tpu.memory_space<vmem>>, %arg5: memref<4x1xf32, #tpu.memory_space<vmem>>, %arg6: memref<4x4xbf16, #tpu.memory_space<vmem>>, %arg7: memref<4x1xf32, #tpu.memory_space<vmem>>, %arg8: memref<1x4x128xf32, #tpu.memory_space<vmem>>, %arg9: memref<4x128xf32, #tpu.memory_space<vmem>>) attributes {dimension_semantics = [#tpu.dimension_semantics<parallel>, #tpu.dimension_semantics<arbitrary>], iteration_bounds = array<i64: 2, 1>, scalar_prefetch = 0 : i64, scratch_operands = 1 : i64, tpu.core_type = #tpu.core_type<tc>, window_params = [{transform_indices = @transform_0, window_bounds = array<i64: 1, 4, 256>}, {transform_indices = @transform_1, window_bounds = array<i64: 256, 128>}, {pipeline_mode = #tpu.pipeline_mode<synchronous>, transform_indices = @transform_2, window_bounds = array<i64: 4, 4>}, {pipeline_mode = #tpu.pipeline_mode<synchronous>, transform_indices = @transform_3, window_bounds = array<i64: 4, 1>}, {pipeline_mode = #tpu.pipeline_mode<synchronous>, transform_indices = @transform_4, window_bounds = array<i64: 4, 4>}, {pipeline_mode = #tpu.pipeline_mode<synchronous>, transform_indices = @transform_5, window_bounds = array<i64: 4, 1>}, {transform_indices = @transform_6, window_bounds = array<i64: 1, 4, 128>}]} {
    %c0_i32 = arith.constant 0 : i32
    %0 = arith.cmpi eq, %arg1, %c0_i32 : i32
    %1 = arith.extui %0 : i1 to i32
    %c0_i32_0 = arith.constant 0 : i32
    %2 = arith.cmpi ne, %1, %c0_i32_0 : i32
    scf.if %2 {
      %cst_11 = arith.constant 0.000000e+00 : f32
      %15 = vector.broadcast %cst_11 : f32 to vector<4x128xf32>
      %c0_12 = arith.constant 0 : index
      %c0_13 = arith.constant 0 : index
      %16 = vector.load %arg9[%c0_12, %c0_13] : memref<4x128xf32, #tpu.memory_space<vmem>>, vector<4x128xf32>
      tpu.vector_store %arg9[%c0_12, %c0_13], %15 {strides = array<i32>} : memref<4x128xf32, #tpu.memory_space<vmem>>, vector<4x128xf32>,
    } else {
    }
    %c0 = arith.constant 0 : index
    %c0_1 = arith.constant 0 : index
    %c0_2 = arith.constant 0 : index
    %3 = vector.load %arg2[%c0, %c0_1, %c0_2] : memref<1x4x256xf32, #tpu.memory_space<vmem>>, vector<1x4x256xf32>
    %4 = vector.shape_cast %3 : vector<1x4x256xf32> to vector<4x256xf32>
    %5 = arith.truncf %4 : vector<4x256xf32> to vector<4x256xbf16>
    %c0_3 = arith.constant 0 : index
    %c0_4 = arith.constant 0 : index
    %6 = vector.load %arg3[%c0_3, %c0_4] : memref<256x128xf32, #tpu.memory_space<vmem>>, vector<256x128xf32>
    %7 = arith.truncf %6 : vector<256x128xf32> to vector<256x128xbf16>
    %c0_5 = arith.constant 0 : index
    %c0_6 = arith.constant 0 : index
    %8 = vector.load %arg9[%c0_5, %c0_6] : memref<4x128xf32, #tpu.memory_space<vmem>>, vector<4x128xf32>
    %cst = arith.constant dense<0.000000e+00> : vector<4x128xf32>
    %9 = tpu.matmul %5, %7, %cst {dimension_numbers = #tpu.dot_dimension_numbers<[1], [0], [0], [1], [0, 0, 1, 1], [], []>} : vector<4x256xbf16>, vector<256x128xbf16>, vector<4x128xf32> -> vector<4x128xf32>
    %10 = arith.addf %8, %9 : vector<4x128xf32>
    %c0_7 = arith.constant 0 : index
    %c0_8 = arith.constant 0 : index
    %11 = vector.load %arg9[%c0_7, %c0_8] : memref<4x128xf32, #tpu.memory_space<vmem>>, vector<4x128xf32>
    tpu.vector_store %arg9[%c0_7, %c0_8], %10 {strides = array<i32>} : memref<4x128xf32, #tpu.memory_space<vmem>>, vector<4x128xf32>,
    %c0_i32_9 = arith.constant 0 : i32
    %12 = arith.cmpi eq, %arg1, %c0_i32_9 : i32
    %13 = arith.extui %12 : i1 to i32
    %c0_i32_10 = arith.constant 0 : i32
    %14 = arith.cmpi ne, %13, %c0_i32_10 : i32
    scf.if %14 {
      %c0_11 = arith.constant 0 : index
      %c0_12 = arith.constant 0 : index
      %15 = vector.load %arg9[%c0_11, %c0_12] : memref<4x128xf32, #tpu.memory_space<vmem>>, vector<4x128xf32>
      %16 = arith.truncf %15 : vector<4x128xf32> to vector<4x128xbf16>
      %c0_13 = arith.constant 0 : index
      %c0_14 = arith.constant 0 : index
      %17 = vector.load %arg4[%c0_13, %c0_14] : memref<4x4xbf16, #tpu.memory_space<vmem>>, vector<4x4xbf16>
      %cst_15 = arith.constant dense<0.000000e+00> : vector<4x128xf32>
      %18 = tpu.matmul %17, %16, %cst_15 {dimension_numbers = #tpu.dot_dimension_numbers<[1], [0], [0], [1], [0, 0, 1, 1], [], []>} : vector<4x4xbf16>, vector<4x128xbf16>, vector<4x128xf32> -> vector<4x128xf32>
      %c0_16 = arith.constant 0 : index
      %c0_17 = arith.constant 0 : index
      %19 = vector.load %arg5[%c0_16, %c0_17] : memref<4x1xf32, #tpu.memory_space<vmem>>, vector<4x1xf32>
      %20 = vector.broadcast %19 : vector<4x1xf32> to vector<4x128xf32>
      %21 = arith.addf %18, %20 : vector<4x128xf32>
      %cst_18 = arith.constant 0.000000e+00 : f32
      %22 = vector.broadcast %cst_18 : f32 to vector<4x128xf32>
      %23 = arith.maximumf %21, %22 : vector<4x128xf32>
      %c0_19 = arith.constant 0 : index
      %c0_20 = arith.constant 0 : index
      %24 = vector.load %arg6[%c0_19, %c0_20] : memref<4x4xbf16, #tpu.memory_space<vmem>>, vector<4x4xbf16>
      %25 = arith.truncf %23 : vector<4x128xf32> to vector<4x128xbf16>
      %cst_21 = arith.constant dense<0.000000e+00> : vector<4x128xf32>
      %26 = tpu.matmul %24, %25, %cst_21 {dimension_numbers = #tpu.dot_dimension_numbers<[1], [0], [0], [1], [0, 0, 1, 1], [], []>} : vector<4x4xbf16>, vector<4x128xbf16>, vector<4x128xf32> -> vector<4x128xf32>
      %c0_22 = arith.constant 0 : index
      %c0_23 = arith.constant 0 : index
      %27 = vector.load %arg7[%c0_22, %c0_23] : memref<4x1xf32, #tpu.memory_space<vmem>>, vector<4x1xf32>
      %28 = vector.broadcast %27 : vector<4x1xf32> to vector<4x128xf32>
      %29 = arith.addf %26, %28 : vector<4x128xf32>
      %c0_24 = arith.constant 0 : index
      %c0_25 = arith.constant 0 : index
      %c0_26 = arith.constant 0 : index
      %30 = vector.load %arg8[%c0_24, %c0_25, %c0_26] : memref<1x4x128xf32, #tpu.memory_space<vmem>>, vector<1x4x128xf32>
      %31 = vector.shape_cast %30 : vector<1x4x128xf32> to vector<4x128xf32>
      %32 = vector.shape_cast %29 : vector<4x128xf32> to vector<1x4x128xf32>
      tpu.vector_store %arg8[%c0_24, %c0_25, %c0_26], %32 {strides = array<i32>} : memref<1x4x128xf32, #tpu.memory_space<vmem>>, vector<1x4x128xf32>,
    } else {
    }
    return
  }
  func.func @transform_0(%arg0: i32, %arg1: i32) -> (i32, i32, i32) {
    %c0_i32 = arith.constant 0 : i32
    %c0_i32_0 = arith.constant 0 : i32
    return %arg0, %c0_i32, %arg1 : i32, i32, i32
  }
  func.func @transform_1(%arg0: i32, %arg1: i32) -> (i32, i32) {
    %c0_i32 = arith.constant 0 : i32
    %c0_i32_0 = arith.constant 0 : i32
    return %arg1, %c0_i32 : i32, i32
  }
  func.func @transform_2(%arg0: i32, %arg1: i32) -> (i32, i32) {
    %c0_i32 = arith.constant 0 : i32
    %c0_i32_0 = arith.constant 0 : i32
    %c0_i32_1 = arith.constant 0 : i32
    return %c0_i32, %c0_i32_0 : i32, i32
  }
  func.func @transform_3(%arg0: i32, %arg1: i32) -> (i32, i32) {
    %c0_i32 = arith.constant 0 : i32
    %c0_i32_0 = arith.constant 0 : i32
    %c0_i32_1 = arith.constant 0 : i32
    return %c0_i32, %c0_i32_0 : i32, i32
  }
  func.func @transform_4(%arg0: i32, %arg1: i32) -> (i32, i32) {
    %c0_i32 = arith.constant 0 : i32
    %c0_i32_0 = arith.constant 0 : i32
    %c0_i32_1 = arith.constant 0 : i32
    return %c0_i32, %c0_i32_0 : i32, i32
  }
  func.func @transform_5(%arg0: i32, %arg1: i32) -> (i32, i32) {
    %c0_i32 = arith.constant 0 : i32
    %c0_i32_0 = arith.constant 0 : i32
    %c0_i32_1 = arith.constant 0 : i32
    return %c0_i32, %c0_i32_0 : i32, i32
  }
  func.func @transform_6(%arg0: i32, %arg1: i32) -> (i32, i32, i32) {
    %c0_i32 = arith.constant 0 : i32
    %c0_i32_0 = arith.constant 0 : i32
    %c0_i32_1 = arith.constant 0 : i32
    return %arg0, %c0_i32, %c0_i32_0 : i32, i32, i32
  }
}

</mosaic_0001>

<bundles_post_ra>
// kernel: global_attention.1
= control target key start
LH: loop header
LB: loop body
LE: loop exit
PB: predicated region body
PF: predicated region fallthrough
CT: control target
= control target key end

     0   :  { %11 = vsyncpa [#allocation4], 0  ;;  %s793_s21 = smov 0   ;;  %s795_s22 = smov 0   ;;  %s872_s0 = inlined_call_operand.vmem [shape: f32[2,4,256], index: 0, kind: input, shape index: {}]   ;;  %s873_s1 = inlined_call_operand.hbm [shape: f32[256,128], index: 1, kind: input, shape index: {}]   ;;  %s874_s2 = inlined_call_operand.vmem [shape: bf16[4,4], index: 2, kind: input, shape index: {}]   ;;  %s875_s3 = inlined_call_operand.vmem [shape: f32[4,1], index: 3, kind: input, shape index: {}]   ;;  %s876_s4 = inlined_call_operand.vmem [shape: bf16[4,4], index: 4, kind: input, shape index: {}]   ;;  %s877_s5 = inlined_call_operand.vmem [shape: f32[4,1], index: 5, kind: input, shape index: {}]   ;;  %s878_s6 = inlined_call_operand.vmem [shape: f32[2,4,128], index: 6, kind: output, shape index: {}]  }
   0x1   :  { %s797_s23 = smov 0  }
   0x2 LB: > { %s603_s24 = sadd.s32 4294967295, %s750_s23   ;;  %s29_s25 = sadd.s32 1, %s746_s22  ;;  %s750_s23 = sphi %s797_s23, %s17_s23   ;;  %s746_s22 = sphi %s795_s22, %s882_s22   ;;  %s742_s21 = sphi %s793_s21, %s881_s21  }
   0x3   : > { %p31_p0 = scmp.ge.s32.totalorder %s29_s25, 2  ;;  %p605_p1 = scmp.ge.s32.totalorder %s750_s23, 1 }
   0x4   : > { %p198_p2 = scmp.lt.s32.totalorder %s750_s23, 3  ;;  %p818_p4 = scmp.eq.s32.totalorder %s603_s24, 0 }
   0x5   : > { %s884_s25 = smov (%p31_p0, %s29_s25), 0  ;;  %s752_s28 = smov [#allocation3]  }
   0x6   : > { %p814_p3 = pnand %p605_p1, %p198_p2  ;;  %s213_s29 = sshll.u32 %s752_s28, 4  ;;  %s214_s29 = int_to_ptr.vmem [resolvable:$true] %s213_s29 }
   0x7   : > { %s709_s30 = scalar_lea.vmem %s214_s29, 4096  ;;  %p717_p11 = scmp.lt.s32.totalorder %s214_s29, %s214_s29 }
   0x8   : > { %p660_p5 = pneg %p814_p3  ;;  %p710_p8 = scmp.ne.s32.totalorder %s214_s29, %s709_s30 }
   0x9   : > { %p718_p12 = scmp.lt.s32.totalorder %s709_s30, %s709_s30 }
   0xa   : > { %p661_p6 = pnand %p818_p4, %p660_p5 }
   0xb   : > { %p719_p13 = por %p718_p12, %p717_p11 }
   0xc   : > { %p700_p7 = pneg %p661_p6 }
   0xe   : > { %p712_p9 = pnand %p710_p8, %p700_p7 }
  0x10   : > { %p713_p10 = pneg %p712_p9 }
  0x12   : > { %p720_p0 = pnand %p719_p13, %p713_p10 }
  0x14   : > { %723 = shalt.err (!%p720_p0)
}
  0x15   : > { %s753_s7 = smov 128   ;;  %s754_s8 = smov 8  }
  0x16   : > { %663 = dma.hbm_to_vmem [thread:$0]  (!%p661_p6), %s873_s1, 4096, %s214_s29, [#allocation4], %s753_s7, %s753_s7, %s754_s8  }
  0x17   : > { %254 = sbr.rel (%p814_p3) target bundleno = 679 (0x2a7), region = 44 }
  0x1c   : > { %737 = dma.done.wait (%p818_p4), [#allocation4], 4096  }
  0x1d   : > { %739 = vsyncadd (%p818_p4), [#allocation4], 4294963200  ;;  %p288_p1 = scmp.lt.s32.totalorder %s742_s21, 1  ;;  %v344_v0 = vld [vmem:[#allocation3 + $0xf0] sm:$0xff]  ;;  %v345_v1 = vld [vmem:[#allocation3 + $0xf8] sm:$0xff]  ;;  %v755_v52 = vmov 0.0  }
  0x1e   : > { %v328_v2 = vld [vmem:[#allocation3 + $0x70] sm:$0xff]  ;;  %v361_v3 = vpack.c.bf16 %v345_v1, %v344_v0  ;;  %v329_v4 = vld [vmem:[#allocation3 + $0x78] sm:$0xff]  ;;  %v342_v5 = vld [vmem:[#allocation3 + $0xe0] sm:$0xff]  ;;  %307 = vst [vmem:[#allocation2] sm:$0xf] %v755_v52  ;;  %644 = vmatprep.subr.bf16.mxu1 %v755_v52  ;;  %vm756_vm0 = vmmov 0  }
  0x1f   : > { %s886_s21 = smov (!%p288_p1, %s742_s21), 1  ;;  %v343_v6 = vld [vmem:[#allocation3 + $0xe8] sm:$0xff]  ;;  %v353_v7 = vpack.c.bf16 %v329_v4, %v328_v2  ;;  %v326_v9 = vld [vmem:[#allocation3 + $0x60] sm:$0xff]  ;;  %v340_v11 = vld [vmem:[#allocation3 + $0xd0] sm:$0xff]  ;;  %646 = vmatprep.mubr.msk.bf16.mxu1 %vm756_vm0, %v755_v52  ;;  %v757_v54 = vmov 0   ;;  %vm421_vm1 = vcmask 1041408  }
  0x20   : > { %v360_v8 = vpack.c.bf16 %v343_v6, %v342_v5  ;;  %v327_v10 = vld [vmem:[#allocation3 + $0x68] sm:$0xff]  ;;  %618 = vmatprep.subr.bf16.mxu0 %v361_v3  ;;  %v341_v12 = vld [vmem:[#allocation3 + $0xd8] sm:$0xff]  ;;  %s617_s11 = sshll.u32 %s886_s21, 3  ;;  %v324_v15 = vld [vmem:[#allocation3 + $0x50] sm:$0xff]  ;;  %696 = vset.pattern.permute.xlu0 %v757_v54  ;;  %vm417_vm2 = vcmask 31744   ;;  %s612_s27 = sshll.u32 %s886_s21, 2 }
  0x21   : > { %619 = vmatpush3.bf16.msra.mxu0 %v353_v7  ;;  %v352_v13 = vpack.c.bf16 %v327_v10, %v326_v9  ;;  %v359_v14 = vpack.c.bf16 %v341_v12, %v340_v11  ;;  %v325_v16 = vld [vmem:[#allocation3 + $0x58] sm:$0xff]  ;;  %v338_v17 = vld [vmem:[#allocation3 + $0xc0] sm:$0xff]  ;;  %v339_v18 = vld [vmem:[#allocation3 + $0xc8] sm:$0xff]  ;;  %s295_s14 = scalar_lea.vmem %s872_s0, %s617_s11  ;;  %s301_s30 = scalar_lea.vmem %s878_s6, %s612_s27 }
  0x22   : > { %620 = vmatprep.subr.bf16.mxu0 %v360_v8  ;;  %v351_v19 = vpack.c.bf16 %v325_v16, %v324_v15  ;;  %v358_v20 = vpack.c.bf16 %v339_v18, %v338_v17  ;;  %v322_v21 = vld [vmem:[#allocation3 + $0x40] sm:$0xff]  ;;  %v323_v22 = vld [vmem:[#allocation3 + $0x48] sm:$0xff]  ;;  %v336_v23 = vld [vmem:[#allocation3 + $0xb0] sm:$0xff] }
  0x23   : > { %v337_v24 = vld [vmem:[#allocation3 + $0xb8] sm:$0xff]  ;;  %v350_v27 = vpack.c.bf16 %v323_v22, %v322_v21  ;;  %v320_v29 = vld [vmem:[#allocation3 + $0x30] sm:$0xff]  ;;  %v334_v32 = vld [vmem:[#allocation3 + $0xa0] sm:$0xff] }
  0x24   : > { %v308_v25 = vld [vmem:[%s295_s14] sm:$0xff]  ;;  %v357_v28 = vpack.c.bf16 %v337_v24, %v336_v23  ;;  %v335_v33 = vld [vmem:[#allocation3 + $0xa8] sm:$0xff]  ;;  %v332_v38 = vld [vmem:[#allocation3 + $0x90] sm:$0xff] }
  0x25   : > { %621 = vmatpush3.bf16.msra.mxu0 %v352_v13  ;;  %v310_v26 = vcombine.high %v308_v25, %v308_v25  ;;  %v321_v30 = vld [vmem:[#allocation3 + $0x38] sm:$0xff]  ;;  %v356_v35 = vpack.c.bf16 %v335_v33, %v334_v32  ;;  %v318_v36 = vld [vmem:[#allocation3 + $0x20] sm:$0xff]  ;;  %v319_v37 = vld [vmem:[#allocation3 + $0x28] sm:$0xff]  ;;  %v312_v51 = vpack.c.bf16 %v308_v25, %v308_v25 }
  0x26   : > { %622 = vmatprep.subr.bf16.mxu0 %v359_v14  ;;  %v349_v34 = vpack.c.bf16 %v321_v30, %v320_v29  ;;  %v333_v39 = vld [vmem:[#allocation3 + $0x98] sm:$0xff]  ;;  %v348_v40 = vpack.c.bf16 %v319_v37, %v318_v36  ;;  %v316_v42 = vld [vmem:[#allocation3 + $0x10] sm:$0xff]  ;;  %v330_v44 = vld [vmem:[#allocation3 + $0x80] sm:$0xff] }
  0x27   : > { %v313_v31 = vpack.c.bf16 %v310_v26, %v310_v26  ;;  %v355_v41 = vpack.c.bf16 %v333_v39, %v332_v38  ;;  %v317_v43 = vld [vmem:[#allocation3 + $0x18] sm:$0xff]  ;;  %v331_v45 = vld [vmem:[#allocation3 + $0x88] sm:$0xff]  ;;  %v314_v48 = vld [vmem:[#allocation3] sm:$0xff] }
  0x28   : > { %v347_v46 = vpack.c.bf16 %v317_v43, %v316_v42  ;;  %v354_v47 = vpack.c.bf16 %v331_v45, %v330_v44  ;;  %v315_v49 = vld [vmem:[#allocation3 + $0x8] sm:$0xff]  ;;  %v411_v53 = vld [vmem:[%s875_s3] sm:$0xf] }
  0x29   : > { %623 = vmatpush3.bf16.msra.mxu0 %v351_v19  ;;  %395 = vmatprep.mubr.bf16.mxu0 %v313_v31  ;;  %v346_v50 = vpack.c.bf16 %v315_v49, %v314_v48  ;;  %v468_v55 = vld [vmem:[%s877_s5] sm:$0xf] }
  0x2a   : > { %624 = vmatprep.subr.bf16.mxu0 %v358_v20  ;;  %414 = vperm.xlu0 %696, %v411_v53   ;;  %v362_v57 = vld [vmem:[#allocation2] sm:$0xf] }
  0x2b   : > { %v410_v2 = vld [vmem:[%s874_s2] sm:$0x3] }
  0x2c   : > { %v466_v12 = vld [vmem:[%s876_s4] sm:$0x3] }
  0x2d   : > { %625 = vmatpush3.bf16.msra.mxu0 %v350_v27 }
  0x2e   : > { %626 = vmatprep.subr.bf16.mxu0 %v357_v28  ;;  %471 = vperm.xlu0 %696, %v468_v55  }
  0x31   : > { %627 = vmatpush3.bf16.msra.mxu0 %v349_v34 }
  0x32   : > { %628 = vmatprep.subr.bf16.mxu0 %v356_v35 }
  0x35   : > { %629 = vmatpush3.bf16.msra.mxu0 %v348_v40 }
  0x36   : > { %630 = vmatprep.subr.bf16.mxu0 %v355_v41 }
  0x39   : > { %631 = vmatpush3.bf16.msra.mxu0 %v347_v46 }
  0x3a   : > { %632 = vmatprep.subr.bf16.mxu0 %v354_v47 }
  0x3d   : > { %633 = vmatpush3.bf16.msra.mxu0 %v346_v50 }
  0x40   : > { %396 = vmatmul.mubr.bf16.vlgmr.msra.gmra.mxu0 %v312_v51 }
  0xa5   : > { %v415_v3 = vpop.permute.xlu0 %414 }
  0xa9   : > { %v472_v13 = vpop.permute.xlu0 %471 }
 0x100   : > { %v634_v56 = vpop.f32.mrf.mxu0 }
 0x102   : > { %v635_v58 = vpop.f32.mrf.mxu0 }
 0x103   : > { %v636_v59 = vadd.f32 %v635_v58, %v634_v56 }
 0x104   : > { %v637_v60 = vpop.f32.mrf.mxu0 }
 0x105   : > { %v403_v61 = vadd.f32 %v636_v59, %v362_v57 }
 0x106   : > { %v638_v62 = vpop.f32.mrf.mxu0 }
 0x107   : > { %404 = vst [vmem:[#allocation2] sm:$0xf] %v403_v61 }
 0x10e   : > { %v408_v63 = vld [vmem:[#allocation2] sm:$0xf] }
 0x10f   : > { %v409_v0 = vpack.c.bf16 %v408_v63, %v408_v63 }
 0x111   : > { %v423_v1 = vsel %vm421_vm1, %v409_v0, 0 }
 0x112   : > { %645 = vmatpush3.bf16.msra.mxu1 %v423_v1 }
 0x113   : > { %650 = vmatprep.subr.bf16.mxu1 %v755_v52 }
 0x115   : > { %647 = vmatmul.mubr.msk.bf16.vlgmr.msra.gmra.mxu1 %vm417_vm2, %v410_v2 }
 0x116   : > { %652 = vmatprep.mubr.msk.bf16.mxu1 %vm756_vm0, %v755_v52 }
 0x1d5   : > { %v459_v4 = vpop.f32.mrf.mxu1 }
 0x1d6   : > { %v460_v5 = vadd.f32 %v459_v4, %v415_v3 }
 0x1d7   : > { %v648_v6 = vpop.f32.mrf.mxu1 }
 0x1d8   : > { %v465_v7 = vmax.f32 %v460_v5, 0.0 }
 0x1d9   : > { %v462_v8 = vpop.f32.mrf.mxu1 }
 0x1da   : > { %v467_v9 = vpack.c.bf16 %v465_v7, %v465_v7 }
 0x1db   : > { %v649_v10 = vpop.f32.mrf.mxu1 }
 0x1dc   : > { %v478_v11 = vsel %vm421_vm1, %v467_v9, 0 }
 0x1dd   : > { %651 = vmatpush3.bf16.msra.mxu1 %v478_v11 }
 0x1e0   : > { %653 = vmatmul.mubr.msk.bf16.vlgmr.msra.gmra.mxu1 %vm417_vm2, %v466_v12 }
 0x2a0   : > { %v514_v14 = vpop.f32.mrf.mxu1 }
 0x2a1   : > { %v515_v15 = vadd.f32 %v514_v14, %v472_v13 }
 0x2a2   : > { %v654_v16 = vpop.f32.mrf.mxu1 }
 0x2a3   : > { %520 = vst [vmem:[%s301_s30] sm:$0xf] %v515_v15 }
 0x2a4   : > { %v517_v17 = vpop.f32.mrf.mxu1 }
 0x2a6   : > { %v655_v18 = vpop.f32.mrf.mxu1 }
 0x2a7 PF: > { %s17_s23 = sadd.s32 1, %s750_s23   ;;  %s881_s21 = smov %s746_s22 }
 0x2a8   : > { %p14_p2 = scmp.ge.s32.totalorder %s17_s23, 4   ;;  %s882_s22 = smov %s884_s25 }
 0x2aa   :  { %16 = sbr.rel (!%p14_p2) target bundleno = 2 (0x2), region = 88 }
 0x2af   :  { %540 = vsyncpa [#allocation4], 1 }
 0x2b0   :  { %542 = vsyncpa [#allocation4 + $0x1], 1 }

</bundles_post_ra>
